<compile_context>
chip_gen: v7x
topology: tpu7x:2x2x1
jax: 0.10.0
libtpu: 0.0.40
codegen_flags: <defaults>
</compile_context>

<pallas_src>
import functools

import numpy as np
import jax
import jax.numpy as jnp
from jax.experimental import pallas as pl
from jax.experimental.pallas import tpu as pltpu


# ----------------------------------------------------------------------------
# Per-generation configuration
# ----------------------------------------------------------------------------
@functools.lru_cache(maxsize=None)
def _tpu_cfg():
    """Tile sizes / VMEM limits per TPU generation (v5e/v6e: 128 MiB VMEM ->
    larger tiles; v7x: 64 MiB -> smaller tiles, tighter limit)."""
    vmem_cap = 64 * 1024 * 1024
    try:
        info = pltpu.get_tpu_info()
        vmem_cap = int(getattr(info, "vmem_capacity_bytes", vmem_cap))
    except Exception:
        pass
    if vmem_cap >= 100 * 1024 * 1024:            # v5e / v6e class (128 MiB)
        return dict(vmem_small=32 << 20, vmem_attn=96 << 20,
                    tq_max=512, tl_max=2048, tm_head=2048)
    # v7x class (64 MiB physical VMEM)
    return dict(vmem_small=24 << 20, vmem_attn=44 << 20,
                tq_max=128, tl_max=1024, tm_head=1024)


def _row_tile(length, max_tile):
    """Largest tile <= max_tile that divides `length` and is a multiple of 8,
    falling back to the full length (full-dim blocks are always legal)."""
    if length <= max_tile:
        return length
    t = max_tile - (max_tile % 8)
    while t >= 8:
        if length % t == 0:
            return t
        t -= 8
    return length


def _lane_tile(length, max_tile):
    """Like _row_tile but multiples of 128 (for lane-dim output tiling)."""
    if length <= max_tile:
        return length
    t = (max_tile // 128) * 128
    while t >= 128:
        if length % t == 0:
            return t
        t -= 128
    return length


def _const_spec(w):
    """BlockSpec for a grid-invariant weight on a 2-D grid."""
    if w.ndim == 2:
        return pl.BlockSpec(w.shape, lambda b, i: (0, 0))
    return pl.BlockSpec(w.shape, lambda b, i: (0, 0, 0))


# ----------------------------------------------------------------------------
# In-kernel math helpers
# ----------------------------------------------------------------------------
def _gelu(x):
    # TODO(synk): tanh-approximation GELU (EUP tanh) instead of torch's exact
    # erf GELU; max abs deviation ~1e-3, accepted per review to unload the VALU.
    return 0.5 * x * (1.0 + jnp.tanh(0.7978845608028654 * (x + 0.044715 * x * x * x)))


def _layernorm(x, w, b, eps=1e-5):
    # One reduction pass: var = E[x^2] - mu^2 (f32, LN-scale data -> stable).
    mu = jnp.mean(x, axis=-1, keepdims=True)
    var = jnp.maximum(jnp.mean(x * x, axis=-1, keepdims=True) - mu * mu, 0.0)
    return (x - mu) * jax.lax.rsqrt(var + eps) * w + b


def _bf16(x):
    return x.astype(jnp.bfloat16)


# ----------------------------------------------------------------------------
# Kernel 1: pointwise MLP (Conv1d k=1 -> GELU -> Conv1d k=1), row-tiled
# ----------------------------------------------------------------------------
def _mlp2_kernel(x_ref, w1_ref, b1_ref, w2_ref, b2_ref, o_ref):
    # TODO(synk): first matmul has K=3 (lane-padded); could be 3 VPU FMAs.
    x = _bf16(x_ref[0])                                               # (tl, Cin)
    h = _gelu(jnp.dot(x, w1_ref[...], preferred_element_type=jnp.float32)
              + b1_ref[...])                                          # (tl, C1) f32
    o = jnp.dot(_bf16(h), w2_ref[...], preferred_element_type=jnp.float32) + b2_ref[...]
    o_ref[0] = o.astype(o_ref.dtype)


def mlp2(x, w1, b1, w2, b2):
    """x: (B, L, Cin); w1: (Cin, C1) bf16; w2: (C1, C2) bf16; b*: (1, C*) f32.
    Output stored bf16 (memory-bound kernel, halves HBM traffic)."""
    cfg = _tpu_cfg()
    B, L, Cin = x.shape
    C1, C2 = w1.shape[1], w2.shape[1]
    tl = _row_tile(L, cfg["tl_max"])
    return pl.pallas_call(
        _mlp2_kernel,
        out_shape=jax.ShapeDtypeStruct((B, L, C2), jnp.bfloat16),
        grid=(B, L // tl),
        in_specs=[
            pl.BlockSpec((1, tl, Cin), lambda b, i: (b, i, 0)),
            _const_spec(w1), _const_spec(b1), _const_spec(w2), _const_spec(b2),
        ],
        out_specs=pl.BlockSpec((1, tl, C2), lambda b, i: (b, i, 0)),
        compiler_params=pltpu.CompilerParams(
            dimension_semantics=("parallel", "parallel"),
            vmem_limit_bytes=cfg["vmem_small"]),
    )(x, w1, b1, w2, b2)


# ----------------------------------------------------------------------------
# Kernel 2: input_proj (Conv1d k=1) + LayerNorm (norm13), row-tiled.
#           Two variants: single input, or two channel-concatenated inputs
#           (the concat is fused via a row-split of the projection weight).
# ----------------------------------------------------------------------------
def _proj_ln1_kernel(x_ref, wp_ref, bp_ref, lnw_ref, lnb_ref, o_ref):
    xa = _bf16(x_ref[0])                                              # (tl, Dm)
    x = jnp.dot(xa, wp_ref[...], preferred_element_type=jnp.float32) + bp_ref[...]
    o_ref[0] = _layernorm(x, lnw_ref[...], lnb_ref[...]).astype(o_ref.dtype)


def _proj_ln2_kernel(xa_ref, xb_ref, wpa_ref, wpb_ref, bp_ref, lnw_ref, lnb_ref, o_ref):
    xa = _bf16(xa_ref[0])                                             # (tl, Ca)
    xb = _bf16(xb_ref[0])                                             # (tl or 1, Cb)
    x = (jnp.dot(xa, wpa_ref[...], preferred_element_type=jnp.float32)
         + jnp.dot(xb, wpb_ref[...], preferred_element_type=jnp.float32)   # broadcasts if 1 row
         + bp_ref[...])
    o_ref[0] = _layernorm(x, lnw_ref[...], lnb_ref[...]).astype(o_ref.dtype)


def proj_ln(x, wp, bp, lnw, lnb):
    cfg = _tpu_cfg()
    B, L, Dm = x.shape
    C = wp.shape[1]
    tl = _row_tile(L, min(cfg["tl_max"], 1024))
    return pl.pallas_call(
        _proj_ln1_kernel,
        out_shape=jax.ShapeDtypeStruct((B, L, C), jnp.bfloat16),
        grid=(B, L // tl),
        in_specs=[
            pl.BlockSpec((1, tl, Dm), lambda b, i: (b, i, 0)),
            _const_spec(wp), _const_spec(bp), _const_spec(lnw), _const_spec(lnb),
        ],
        out_specs=pl.BlockSpec((1, tl, C), lambda b, i: (b, i, 0)),
        compiler_params=pltpu.CompilerParams(
            dimension_semantics=("parallel", "parallel"),
            vmem_limit_bytes=cfg["vmem_small"]),
    )(x, wp, bp, lnw, lnb)


def proj_ln_cat2(xa, xb, wpa, wpb, bp, lnw, lnb):
    """LN(proj(cat([xa, xb], channel))) without materializing the concat.
    xb may be per-row ((B, L, Cb)) or a broadcast row ((B, 1, Cb))."""
    cfg = _tpu_cfg()
    B, L, Ca = xa.shape
    Cb = xb.shape[-1]
    C = wpa.shape[1]
    tl = _row_tile(L, min(cfg["tl_max"], 1024))
    if xb.shape[1] == 1:
        xb_spec = pl.BlockSpec((1, 1, Cb), lambda b, i: (b, 0, 0))
    else:
        xb_spec = pl.BlockSpec((1, tl, Cb), lambda b, i: (b, i, 0))
    return pl.pallas_call(
        _proj_ln2_kernel,
        out_shape=jax.ShapeDtypeStruct((B, L, C), jnp.bfloat16),
        grid=(B, L // tl),
        in_specs=[
            pl.BlockSpec((1, tl, Ca), lambda b, i: (b, i, 0)),
            xb_spec,
            _const_spec(wpa), _const_spec(wpb), _const_spec(bp),
            _const_spec(lnw), _const_spec(lnb),
        ],
        out_specs=pl.BlockSpec((1, tl, C), lambda b, i: (b, i, 0)),
        compiler_params=pltpu.CompilerParams(
            dimension_semantics=("parallel", "parallel"),
            vmem_limit_bytes=cfg["vmem_small"]),
    )(xa, xb, wpa, wpb, bp, lnw, lnb)


# ----------------------------------------------------------------------------
# Kernel 3: 4-head attention + residual + norm12 + GELU-FFN + residual.
#           K/V are projected ONCE per batch element into per-head bf16 VMEM
#           scratch (under pl.when on the first query tile) and reused across
#           all query tiles (tile axis is "arbitrary"; batch is "parallel").
#           Per-head weights are pre-split so no mid-lane-group slicing.
#           1/sqrt(Dh) is pre-folded into wq/bq; bk is dropped (softmax-
#           invariant: q·bk is constant across keys for a given query row).
# ----------------------------------------------------------------------------
def _fill_kv_scratch(nhead, x2, wk_ref, wv_ref, bv_ref, k_sc, v_sc):
    for h in range(nhead):
        k_sc[h] = jnp.dot(x2, wk_ref[h],
                          preferred_element_type=jnp.float32).astype(k_sc.dtype)
        v_sc[h] = (jnp.dot(x2, wv_ref[h], preferred_element_type=jnp.float32)
                   + bv_ref[h]).astype(v_sc.dtype)


def _mha_ffn_tile(nhead, x1, k_sc, v_sc,
                  wq_ref, bq_ref, wo_ref, bo_ref,
                  ln12w_ref, ln12b_ref, w11_ref, b11_ref, w12_ref, b12_ref):
    """x1: (tq, C) bf16 query tile (already proj+LN'd).  k_sc/v_sc: per-head
    (nhead, Lk, Dh) bf16 scratch.  Returns (tq, C) f32."""
    rows = x1.shape[0]
    C = wo_ref.shape[-1]
    acc = jnp.zeros((rows, C), jnp.float32)
    for h in range(nhead):
        q_h = (jnp.dot(x1, wq_ref[h], preferred_element_type=jnp.float32)
               + bq_ref[h]).astype(jnp.bfloat16)                        # (tq, Dh)
        s = jax.lax.dot_general(q_h, k_sc[h], (((1,), (1,)), ((), ())),
                                preferred_element_type=jnp.float32)     # (tq, Lk)
        s = s - jnp.max(s, axis=-1, keepdims=True)
        p = jnp.exp(s)
        p = p * pl.reciprocal(jnp.sum(p, axis=-1, keepdims=True), approx=True)
        pv = jnp.dot(p.astype(jnp.bfloat16), v_sc[h],
                     preferred_element_type=jnp.float32)                # (tq, Dh)
        # attn @ Wo == sum_h head_h @ Wo[h]; accumulate full-width, no concat.
        acc = acc + jnp.dot(pv.astype(jnp.bfloat16), wo_ref[h],
                            preferred_element_type=jnp.float32)         # (tq, C)
    y = x1.astype(jnp.float32) + acc + bo_ref[...]                      # residual
    y = _layernorm(y, ln12w_ref[...], ln12b_ref[...])
    hdn = _gelu(jnp.dot(_bf16(y), w11_ref[...],
                        preferred_element_type=jnp.float32) + b11_ref[...])
    ff = jnp.dot(_bf16(hdn), w12_ref[...],
                 preferred_element_type=jnp.float32) + b12_ref[...]
    return y + ff


def _attn_ffn_self_kernel(nhead, tq, n_tiles,
                          x_ref,
                          wq_ref, bq_ref, wk_ref, wv_ref, bv_ref,
                          wo_ref, bo_ref, ln12w_ref, ln12b_ref,
                          w11_ref, b11_ref, w12_ref, b12_ref,
                          o_ref, k_sc, v_sc):
    @pl.when(pl.program_id(1) == 0)
    def _():
        _fill_kv_scratch(nhead, x_ref[0], wk_ref, wv_ref, bv_ref, k_sc, v_sc)

    if n_tiles == 1:
        x1 = x_ref[0]                                                   # (Lq, C)
    else:
        start = pl.multiple_of(pl.program_id(1) * tq, 8)
        x1 = x_ref[0, pl.ds(start, tq), :]                              # query tile
    out = _mha_ffn_tile(nhead, x1, k_sc, v_sc, wq_ref, bq_ref, wo_ref, bo_ref,
                        ln12w_ref, ln12b_ref, w11_ref, b11_ref, w12_ref, b12_ref)
    o_ref[0] = out.astype(o_ref.dtype)


def _attn_ffn_cross_kernel(nhead,
                           x1_ref, x2_ref,
                           wq_ref, bq_ref, wk_ref, wv_ref, bv_ref,
                           wo_ref, bo_ref, ln12w_ref, ln12b_ref,
                           w11_ref, b11_ref, w12_ref, b12_ref,
                           o_ref, k_sc, v_sc):
    @pl.when(pl.program_id(1) == 0)
    def _():
        _fill_kv_scratch(nhead, x2_ref[0], wk_ref, wv_ref, bv_ref, k_sc, v_sc)

    out = _mha_ffn_tile(nhead, x1_ref[0], k_sc, v_sc, wq_ref, bq_ref, wo_ref,
                        bo_ref, ln12w_ref, ln12b_ref, w11_ref, b11_ref,
                        w12_ref, b12_ref)
    o_ref[0] = out.astype(o_ref.dtype)


_ATTN_WEIGHT_NAMES = ["wq", "bq", "wk", "wv", "bv", "wo", "bo",
                      "ln12_w", "ln12_b", "w11", "b11", "w12", "b12"]


def cross_transformer_block(p, xq, xkv=None, *, tq_max=None):
    """Attention + FFN half of cross_transformer.  xq/xkv are already
    proj+LN'd (B, L, C) bf16 streams.  xkv=None -> self-attention."""
    cfg = _tpu_cfg()
    if tq_max is None:
        tq_max = cfg["tq_max"]
    B, Lq, C = xq.shape
    self_attn = xkv is None
    Lk = Lq if self_attn else xkv.shape[1]
    nhead = p["nhead"]
    Dh = C // nhead
    tq = _row_tile(Lq, tq_max)
    n_tiles = Lq // tq
    weights = [p[n] for n in _ATTN_WEIGHT_NAMES]
    w_specs = [_const_spec(w) for w in weights]
    kv_spec = pl.BlockSpec((1, Lk, C), lambda b, i: (b, 0, 0))
    out_spec = pl.BlockSpec((1, tq, C), lambda b, i: (b, i, 0))
    scratch = [pltpu.VMEM((nhead, Lk, Dh), jnp.bfloat16),   # K per head
               pltpu.VMEM((nhead, Lk, Dh), jnp.bfloat16)]   # V per head
    if self_attn:
        kern = functools.partial(_attn_ffn_self_kernel, nhead, tq, n_tiles)
        in_specs = [kv_spec] + w_specs
        operands = (xq, *weights)
    else:
        kern = functools.partial(_attn_ffn_cross_kernel, nhead)
        q_spec = pl.BlockSpec((1, tq, C), lambda b, i: (b, i, 0))
        in_specs = [q_spec, kv_spec] + w_specs
        operands = (xq, xkv, *weights)
    return pl.pallas_call(
        kern,
        out_shape=jax.ShapeDtypeStruct((B, Lq, C), jnp.bfloat16),
        grid=(B, n_tiles),
        in_specs=in_specs,
        out_specs=out_spec,
        scratch_shapes=scratch,
        compiler_params=pltpu.CompilerParams(
            # Tile axis must be "arbitrary" so the K/V scratch is reused across
            # query tiles of the same batch element; batch stays "parallel".
            dimension_semantics=("parallel", "arbitrary"),
            vmem_limit_bytes=cfg["vmem_attn"]),
    )(*operands)


# ----------------------------------------------------------------------------
# Kernel 4: occupancy head (conv_out1 -> GELU -> conv_out), tiled over M with
#           lane-dense (1, tm) logit blocks; sigmoid + threshold in the wrapper.
# ----------------------------------------------------------------------------
def _head_kernel(x_ref, w1_ref, b1_ref, w2t_ref, b2_ref, o_ref):
    x = _bf16(x_ref[0])                                                  # (tm, C)
    h = _gelu(jnp.dot(x, w1_ref[...], preferred_element_type=jnp.float32)
              + b1_ref[...])                                             # (tm, 64)
    # Final 64 -> 1 projection computed transposed: (1,64) . (tm,64)^T -> (1, tm)
    logits_t = jax.lax.dot_general(w2t_ref[...], _bf16(h),
                                   (((1,), (1,)), ((), ())),
                                   preferred_element_type=jnp.float32) + b2_ref[...]
    o_ref[0] = logits_t.astype(o_ref.dtype)


def occupancy_head(x, w1, b1, w2t, b2):
    cfg = _tpu_cfg()
    B, M, Cin = x.shape
    tm = _lane_tile(M, cfg["tm_head"])
    return pl.pallas_call(
        _head_kernel,
        out_shape=jax.ShapeDtypeStruct((B, 1, M), jnp.float32),
        grid=(B, M // tm),
        in_specs=[
            pl.BlockSpec((1, tm, Cin), lambda b, i: (b, i, 0)),
            _const_spec(w1), _const_spec(b1),
            _const_spec(w2t),                      # (1, 64)
            _const_spec(b2),                       # (1, 1)
        ],
        out_specs=pl.BlockSpec((1, 1, tm), lambda b, i: (b, 0, i)),
        compiler_params=pltpu.CompilerParams(
            dimension_semantics=("parallel", "parallel"),
            vmem_limit_bytes=cfg["vmem_small"]),
    )(x, w1, b1, w2t, b2)


# ----------------------------------------------------------------------------
# Deterministic parameter initialization + prep (transpose / bf16 / scale fold
# / per-head weight splitting)
# ----------------------------------------------------------------------------
def _init_linear(key, out_f, in_f):
    kw, kb = jax.random.split(key)
    bound = 1.0 / float(np.sqrt(in_f))
    w = jax.random.uniform(kw, (out_f, in_f), jnp.float32, -bound, bound)
    b = jax.random.uniform(kb, (out_f,), jnp.float32, -bound, bound)
    return w, b


def _prep_conv(key, out_f, in_f):
    w, b = _init_linear(key, out_f, in_f)
    return w.T.astype(jnp.bfloat16), b[None, :]


def _split_cols(w, nhead):      # (Cin, C) -> (nhead, Cin, Dh)
    Dh = w.shape[1] // nhead
    return jnp.stack([w[:, h * Dh:(h + 1) * Dh] for h in range(nhead)], axis=0)


def _split_rows(w, nhead):      # (C, Cout) -> (nhead, Dh, Cout)
    Dh = w.shape[0] // nhead
    return jnp.stack([w[h * Dh:(h + 1) * Dh, :] for h in range(nhead)], axis=0)


def _split_bias(b, nhead):      # (C,) -> (nhead, 1, Dh)
    Dh = b.shape[0] // nhead
    return jnp.stack([b[h * Dh:(h + 1) * Dh][None, :] for h in range(nhead)], axis=0)


def _init_cross_transformer(key, d_model, d_model_out, nhead=4, dim_ff=1024,
                            wp_split=None):
    ks = jax.random.split(key, 5)
    C = d_model_out
    wp, bp = _init_linear(ks[0], C, d_model)           # input_proj (Conv1d k=1)
    win, bin_ = _init_linear(ks[1], 3 * C, C)          # MHA packed in_proj
    wo, bo = _init_linear(ks[2], C, C)                 # MHA out_proj
    w11, b11 = _init_linear(ks[3], dim_ff, C)          # linear11
    w12, b12 = _init_linear(ks[4], C, dim_ff)          # linear12
    Dh = C // nhead
    scale = 1.0 / float(np.sqrt(Dh))
    # fold 1/sqrt(Dh) into the query projection; drop bk (softmax-invariant).
    wq_full = win[0:C].T * scale
    bq_full = bin_[0:C] * scale
    wk_full = win[C:2 * C].T
    wv_full = win[2 * C:3 * C].T
    bv_full = bin_[2 * C:3 * C]
    p = dict(
        nhead=nhead, C=C,
        bp=bp[None, :],
        ln13_w=jnp.ones((1, C), jnp.float32), ln13_b=jnp.zeros((1, C), jnp.float32),
        wq=_split_cols(wq_full, nhead).astype(jnp.bfloat16),   # (H, C, Dh)
        bq=_split_bias(bq_full, nhead),                        # (H, 1, Dh) f32
        wk=_split_cols(wk_full, nhead).astype(jnp.bfloat16),
        wv=_split_cols(wv_full, nhead).astype(jnp.bfloat16),
        bv=_split_bias(bv_full, nhead),
        wo=_split_rows(wo.T, nhead).astype(jnp.bfloat16),      # (H, Dh, C)
        bo=bo[None, :],
        ln12_w=jnp.ones((1, C), jnp.float32), ln12_b=jnp.zeros((1, C), jnp.float32),
        w11=w11.T.astype(jnp.bfloat16), b11=b11[None, :],
        w12=w12.T.astype(jnp.bfloat16), b12=b12[None, :],
    )
    wpt = wp.T                                           # (d_model, C)
    if wp_split is None:
        p["wp"] = wpt.astype(jnp.bfloat16)
    else:                                                # fused channel-concat input
        p["wp_a"] = wpt[:wp_split].astype(jnp.bfloat16)
        p["wp_b"] = wpt[wp_split:].astype(jnp.bfloat16)
    return p


def init_primal_extractor(key, channel=128, nhead=4, dim_ff=1024):
    assert channel == 128, "PrimalExtractor's hardcoded dims require channel=128"
    ks = jax.random.split(key, 12)
    # feat_g branch is computed in the wrapper with plain XLA (1-row matmuls).
    w11g, b11g = _init_linear(ks[0], 256, 512)
    w1g, b1g = _init_linear(ks[1], channel, 256)
    wout, bout = _init_linear(ks[11], 1, 64)
    return {
        "conv_11": (w11g.T, b11g[None, :]),                     # f32 (wrapper path)
        "conv_1": (w1g.T, b1g[None, :]),                        # f32 (wrapper path)
        "conv_x": _prep_conv(ks[2], 64, 3),
        "conv_x1": _prep_conv(ks[3], channel, 64),
        "conv_z": _prep_conv(ks[4], 64, 3),
        "conv_z1": _prep_conv(ks[5], channel * 2, 64),
        "sfa0": _init_cross_transformer(ks[6], channel * 2, channel * 2, nhead,
                                        dim_ff, wp_split=channel),
        "gdp2": _init_cross_transformer(ks[7], channel * 2, 256, nhead, dim_ff),
        "sfa2": _init_cross_transformer(ks[8], 512, 512, nhead, dim_ff,
                                        wp_split=channel * 2),
        "sfa3": _init_cross_transformer(ks[9], 512, channel, nhead, dim_ff),
        "conv_out1": _prep_conv(ks[10], 64, channel),
        "conv_out_t": (wout.astype(jnp.bfloat16), bout[None, :]),   # (1,64) bf16, (1,1) f32
        "threshold": jnp.asarray(0.5, jnp.float32),
    }


# ----------------------------------------------------------------------------
# PrimalExtractor forward (PyTorch NCW interface)
# ----------------------------------------------------------------------------
def primal_extractor_fwd(params, coarse, feat_g, noise, *, attn_tile=None):
    """coarse: (B, 3, N), feat_g: (B, 512, 1), noise: (B, 3, M).
    Returns (x: (B, 1, M) f32 logits, mask: (B, 1, M) bool)."""
    coarse_nlc = jnp.transpose(coarse, (0, 2, 1))                    # (B, N, 3)
    noise_nlc = jnp.transpose(noise, (0, 2, 1))                      # (B, M, 3)

    # y = conv_x1(GELU(conv_x(coarse)))
    y = mlp2(coarse_nlc, *params["conv_x"], *params["conv_x1"])      # (B, N, 128) bf16

    # feat_g branch: plain XLA in the wrapper (1-row matmuls per batch element)
    fg = feat_g[:, :, 0]                                             # (B, 512)
    w11g, b11g = params["conv_11"]
    w1g, b1g = params["conv_1"]
    hg = jax.nn.gelu(jnp.dot(fg, w11g) + b11g, approximate=False)    # (B, 256)
    fg_row = ((jnp.dot(hg, w1g) + b1g)[:, None, :]).astype(jnp.bfloat16)  # (B, 1, 128)

    # z = conv_z1(GELU(conv_z(noise)))
    z = mlp2(noise_nlc, *params["conv_z"], *params["conv_z1"])       # (B, M, 256) bf16

    # sfa0: self-attention on cat([y, fg_rep]); concat fused into input_proj
    sfa0 = params["sfa0"]
    x0 = proj_ln_cat2(y, fg_row, sfa0["wp_a"], sfa0["wp_b"], sfa0["bp"],
                      sfa0["ln13_w"], sfa0["ln13_b"])                # (B, N, 256)
    y0 = cross_transformer_block(sfa0, x0, tq_max=attn_tile)         # (B, N, 256)

    # gdp2: cross attention, query = z, key/value = y0
    gdp2 = params["gdp2"]
    q1 = proj_ln(z, gdp2["wp"], gdp2["bp"], gdp2["ln13_w"], gdp2["ln13_b"])
    k1 = proj_ln(y0, gdp2["wp"], gdp2["bp"], gdp2["ln13_w"], gdp2["ln13_b"])
    x1 = cross_transformer_block(gdp2, q1, k1, tq_max=attn_tile)     # (B, M, 256)

    # sfa2: self-attention on cat([z, x1]); concat fused into input_proj
    sfa2 = params["sfa2"]
    x2in = proj_ln_cat2(z, x1, sfa2["wp_a"], sfa2["wp_b"], sfa2["bp"],
                        sfa2["ln13_w"], sfa2["ln13_b"])              # (B, M, 512)
    z2 = cross_transformer_block(sfa2, x2in, tq_max=attn_tile)       # (B, M, 512)

    # sfa3: self-attention, 512 -> 128
    sfa3 = params["sfa3"]
    x3in = proj_ln(z2, sfa3["wp"], sfa3["bp"], sfa3["ln13_w"], sfa3["ln13_b"])
    z3 = cross_transformer_block(sfa3, x3in, tq_max=attn_tile)       # (B, M, 128)

    # head: lane-dense logits (B, 1, M); sigmoid + threshold mask in the wrapper
    logits = occupancy_head(z3, *params["conv_out1"], *params["conv_out_t"])
    occ = jax.nn.sigmoid(logits)
    mask = occ >= params["threshold"]
    return logits, mask


# ----------------------------------------------------------------------------
if __name__ == "__main__":
    key = jax.random.PRNGKey(0)
    kp, kc, kf, kn = jax.random.split(key, 4)

    channel = 128          # fixed by the module's hardcoded 512/256 dims
    B, N, M = 2, 64, 64    # small batch / point counts

    params = init_primal_extractor(kp, channel=channel)
    coarse = jax.random.normal(kc, (B, 3, N), jnp.float32)
    feat_g = jax.random.normal(kf, (B, 512, 1), jnp.float32)
    noise = jax.random.normal(kn, (B, 3, M), jnp.float32)

    # attn_tile=32 exercises the multi-query-tile path (K/V scratch reuse).
    x, mask = primal_extractor_fwd(params, coarse, feat_g, noise, attn_tile=32)
    jax.block_until_ready((x, mask))

    assert x.shape == (B, 1, M) and x.dtype == jnp.float32
    assert mask.shape == (B, 1, M) and mask.dtype == jnp.bool_
    assert bool(jnp.all(jnp.isfinite(x)))
    print("KERNEL_OK")
</pallas_src>

<mosaic_0001>
module attributes {stable_mosaic.version = 11 : i64} {
  func.func @_mlp2_kernel(%arg0: i32, %arg1: i32, %arg2: memref<1x64x3xf32, #tpu.memory_space<vmem>>, %arg3: memref<3x64xbf16, #tpu.memory_space<vmem>>, %arg4: memref<1x64xf32, #tpu.memory_space<vmem>>, %arg5: memref<64x128xbf16, #tpu.memory_space<vmem>>, %arg6: memref<1x128xf32, #tpu.memory_space<vmem>>, %arg7: memref<1x64x128xbf16, #tpu.memory_space<vmem>>) attributes {dimension_semantics = [#tpu.dimension_semantics<parallel>, #tpu.dimension_semantics<parallel>], iteration_bounds = array<i64: 2, 1>, scalar_prefetch = 0 : i64, scratch_operands = 0 : i64, tpu.core_type = #tpu.core_type<tc>, window_params = [{transform_indices = @transform_0, window_bounds = array<i64: 1, 64, 3>}, {pipeline_mode = #tpu.pipeline_mode<synchronous>, transform_indices = @transform_1, window_bounds = array<i64: 3, 64>}, {pipeline_mode = #tpu.pipeline_mode<synchronous>, transform_indices = @transform_2, window_bounds = array<i64: 1, 64>}, {pipeline_mode = #tpu.pipeline_mode<synchronous>, transform_indices = @transform_3, window_bounds = array<i64: 64, 128>}, {pipeline_mode = #tpu.pipeline_mode<synchronous>, transform_indices = @transform_4, window_bounds = array<i64: 1, 128>}, {transform_indices = @transform_5, window_bounds = array<i64: 1, 64, 128>}]} {
    %c0 = arith.constant 0 : index
    %c0_0 = arith.constant 0 : index
    %c0_1 = arith.constant 0 : index
    %0 = vector.load %arg2[%c0, %c0_0, %c0_1] : memref<1x64x3xf32, #tpu.memory_space<vmem>>, vector<1x64x3xf32>
    %1 = vector.shape_cast %0 : vector<1x64x3xf32> to vector<64x3xf32>
    %2 = arith.truncf %1 : vector<64x3xf32> to vector<64x3xbf16>
    %c0_2 = arith.constant 0 : index
    %c0_3 = arith.constant 0 : index
    %3 = vector.load %arg3[%c0_2, %c0_3] : memref<3x64xbf16, #tpu.memory_space<vmem>>, vector<3x64xbf16>
    %cst = arith.constant dense<0.000000e+00> : vector<64x64xf32>
    %4 = tpu.matmul %2, %3, %cst {dimension_numbers = #tpu.dot_dimension_numbers<[1], [0], [0], [1], [0, 0, 1, 1], [], []>} : vector<64x3xbf16>, vector<3x64xbf16>, vector<64x64xf32> -> vector<64x64xf32>
    %c0_4 = arith.constant 0 : index
    %c0_5 = arith.constant 0 : index
    %5 = vector.load %arg4[%c0_4, %c0_5] : memref<1x64xf32, #tpu.memory_space<vmem>>, vector<1x64xf32>
    %6 = vector.broadcast %5 : vector<1x64xf32> to vector<64x64xf32>
    %7 = arith.addf %4, %6 : vector<64x64xf32>
    %cst_6 = arith.constant 5.000000e-01 : f32
    %8 = vector.broadcast %cst_6 : f32 to vector<64x64xf32>
    %9 = arith.mulf %8, %7 : vector<64x64xf32>
    %cst_7 = arith.constant 4.471500e-02 : f32
    %10 = vector.broadcast %cst_7 : f32 to vector<64x64xf32>
    %11 = arith.mulf %10, %7 : vector<64x64xf32>
    %12 = arith.mulf %11, %7 : vector<64x64xf32>
    %13 = arith.mulf %12, %7 : vector<64x64xf32>
    %14 = arith.addf %7, %13 : vector<64x64xf32>
    %cst_8 = arith.constant 0.797884583 : f32
    %15 = vector.broadcast %cst_8 : f32 to vector<64x64xf32>
    %16 = arith.mulf %15, %14 : vector<64x64xf32>
    %17 = math.tanh %16 : vector<64x64xf32>
    %cst_9 = arith.constant 1.000000e+00 : f32
    %18 = vector.broadcast %cst_9 : f32 to vector<64x64xf32>
    %19 = arith.addf %18, %17 : vector<64x64xf32>
    %20 = arith.mulf %9, %19 : vector<64x64xf32>
    %21 = arith.truncf %20 : vector<64x64xf32> to vector<64x64xbf16>
    %c0_10 = arith.constant 0 : index
    %c0_11 = arith.constant 0 : index
    %22 = vector.load %arg5[%c0_10, %c0_11] : memref<64x128xbf16, #tpu.memory_space<vmem>>, vector<64x128xbf16>
    %cst_12 = arith.constant dense<0.000000e+00> : vector<64x128xf32>
    %23 = tpu.matmul %21, %22, %cst_12 {dimension_numbers = #tpu.dot_dimension_numbers<[1], [0], [0], [1], [0, 0, 1, 1], [], []>} : vector<64x64xbf16>, vector<64x128xbf16>, vector<64x128xf32> -> vector<64x128xf32>
    %c0_13 = arith.constant 0 : index
    %c0_14 = arith.constant 0 : index
    %24 = vector.load %arg6[%c0_13, %c0_14] : memref<1x128xf32, #tpu.memory_space<vmem>>, vector<1x128xf32>
    %25 = vector.broadcast %24 : vector<1x128xf32> to vector<64x128xf32>
    %26 = arith.addf %23, %25 : vector<64x128xf32>
    %27 = arith.truncf %26 : vector<64x128xf32> to vector<64x128xbf16>
    %c0_15 = arith.constant 0 : index
    %c0_16 = arith.constant 0 : index
    %c0_17 = arith.constant 0 : index
    %28 = vector.load %arg7[%c0_15, %c0_16, %c0_17] : memref<1x64x128xbf16, #tpu.memory_space<vmem>>, vector<1x64x128xbf16>
    %29 = vector.shape_cast %28 : vector<1x64x128xbf16> to vector<64x128xbf16>
    %30 = vector.shape_cast %27 : vector<64x128xbf16> to vector<1x64x128xbf16>
    tpu.vector_store %arg7[%c0_15, %c0_16, %c0_17], %30 {strides = array<i32>} : memref<1x64x128xbf16, #tpu.memory_space<vmem>>, vector<1x64x128xbf16>,
    return
  }
  func.func @transform_0(%arg0: i32, %arg1: i32) -> (i32, i32, i32) {
    %c0_i32 = arith.constant 0 : i32
    %c0_i32_0 = arith.constant 0 : i32
    return %arg0, %arg1, %c0_i32 : i32, i32, i32
  }
  func.func @transform_1(%arg0: i32, %arg1: i32) -> (i32, i32) {
    %c0_i32 = arith.constant 0 : i32
    %c0_i32_0 = arith.constant 0 : i32
    %c0_i32_1 = arith.constant 0 : i32
    return %c0_i32, %c0_i32_0 : i32, i32
  }
  func.func @transform_2(%arg0: i32, %arg1: i32) -> (i32, i32) {
    %c0_i32 = arith.constant 0 : i32
    %c0_i32_0 = arith.constant 0 : i32
    %c0_i32_1 = arith.constant 0 : i32
    return %c0_i32, %c0_i32_0 : i32, i32
  }
  func.func @transform_3(%arg0: i32, %arg1: i32) -> (i32, i32) {
    %c0_i32 = arith.constant 0 : i32
    %c0_i32_0 = arith.constant 0 : i32
    %c0_i32_1 = arith.constant 0 : i32
    return %c0_i32, %c0_i32_0 : i32, i32
  }
  func.func @transform_4(%arg0: i32, %arg1: i32) -> (i32, i32) {
    %c0_i32 = arith.constant 0 : i32
    %c0_i32_0 = arith.constant 0 : i32
    %c0_i32_1 = arith.constant 0 : i32
    return %c0_i32, %c0_i32_0 : i32, i32
  }
  func.func @transform_5(%arg0: i32, %arg1: i32) -> (i32, i32, i32) {
    %c0_i32 = arith.constant 0 : i32
    %c0_i32_0 = arith.constant 0 : i32
    return %arg0, %arg1, %c0_i32 : i32, i32, i32
  }
}

</mosaic_0001>

<bundles_post_ra>
// kernel: tpu_custom_call.1
= control target key start
LH: loop header
LB: loop body
LE: loop exit
PB: predicated region body
PF: predicated region fallthrough
CT: control target
= control target key end

     0   :  { %10 = vsyncpa [#allocation3], 0  ;;  %s1181_s0 = inlined_call_operand.vmem [shape: f32[2,64,3], index: 0, kind: input, shape index: {}]   ;;  %s1182_s1 = inlined_call_operand.vmem [shape: bf16[3,64], index: 1, kind: input, shape index: {}]   ;;  %s1183_s2 = inlined_call_operand.vmem [shape: f32[1,64], index: 2, kind: input, shape index: {}]   ;;  %s1184_s3 = inlined_call_operand.vmem [shape: bf16[64,128], index: 3, kind: input, shape index: {}]   ;;  %s1185_s4 = inlined_call_operand.vmem [shape: f32[1,128], index: 4, kind: input, shape index: {}]   ;;  %s1186_s5 = inlined_call_operand.hbm [shape: bf16[2,64,128], index: 5, kind: output, shape index: {}]  }
   0x1   :  { %12 = vsyncpa [#allocation3 + $0x1], 0  ;;  %s995_s18 = smov 0   ;;  %s997_s19 = smov 0  }
   0x2   :  { %s999_s20 = smov 0   ;;  %s1001_s21 = smov 0  }
   0x3   :  { %s1003_s22 = smov 0   ;;  %s1005_s23 = smov 0  }
   0x4 LB: > { %s688_s24 = sadd.s32 4294967295, %s959_s23   ;;  %s689_s25 = sadd.s32 4294967294, %s959_s23   ;;  %s959_s23 = sphi %s1005_s23, %s18_s23   ;;  %s955_s22 = sphi %s1003_s22, %s1193_s22   ;;  %s951_s21 = sphi %s1001_s21, %s1192_s21   ;;  %s947_s20 = sphi %s999_s20, %s1191_s20   ;;  %s943_s19 = sphi %s997_s19, %s1190_s19   ;;  %s939_s18 = sphi %s995_s18, %s1189_s18  }
   0x5   : > { %s30_s26 = sadd.s32 1, %s955_s22  ;;  %s151_s27 = sadd.s32 1, %s947_s20 }
   0x6   : > { %p32_p0 = scmp.ge.s32.totalorder %s30_s26, 2  ;;  %p161_p1 = scmp.ne.s32.totalorder %s947_s20, %s943_s19 }
   0x7   : > { %p162_p2 = scmp.eq.s32.totalorder %s688_s24, 1  ;;  %p167_p3 = scmp.ne.s32.totalorder %s943_s19, %s939_s18 }
   0x8   : > { %s1195_s26 = smov (%p32_p0, %s30_s26), 0  ;;  %p168_p5 = scmp.eq.s32.totalorder %s689_s25, 1 }
   0x9   : > { %p1035_p4 = por %p162_p2, %p161_p1  ;;  %s146_s29 = ssub.s32 %s955_s22, %s1195_s26 }
   0xa   : > { %p692_p6 = scmp.ge.s32.totalorder %s959_s23, 1  ;;  %p149_p7 = scmp.eq.s32.totalorder %s146_s29, 0 }
   0xb   : > { %p1042_p8 = por %p168_p5, %p167_p3  ;;  %p211_p9 = scmp.lt.s32.totalorder %s959_s23, 3 }
   0xc   : > { %s1048_s6 = scalar_select %p149_p7, %s947_s20, %s151_s27  }
   0xd   : > { %p212_p10 = pnand %p692_p6, %p211_p9 }
   0xe   : > { %v267_v0 = vld [vmem:[%s1182_s1] sm:$0x3] (!%p212_p10)  ;;  %vm288_vm0 = vcmask (!%p212_p10), 1040384   ;;  %vm289_vm1 = vcmask (!%p212_p10), 1041408   ;;  %p244_p11 = scmp.lt.s32.totalorder (!%p212_p10), %s951_s21, 1  ;;  %v961_v1 = vmov (!%p212_p10), 65535  }
   0xf   : > { %215 = sbr.rel (%p212_p10) target bundleno = 517 (0x205), region = 40  ;;  %v290_v2 = vsel (!%p212_p10), %vm288_vm0, 4294967295, %v961_v1  ;;  %vm275_vm2 = vcmask (!%p212_p10), 23552   ;;  %v861_v17 = vld [vmem:[%s1184_s3] sm:$0xff] (!%p212_p10)   ;;  %v862_v18 = vld [vmem:[%s1184_s3 + $0x8] sm:$0xff] (!%p212_p10)   ;;  %v863_v19 = vld [vmem:[%s1184_s3 + $0x10] sm:$0xff] (!%p212_p10)  }
  0x10   : > { %v291_v3 = vsel (!%p212_p10), %vm289_vm1, %v290_v2, 0  ;;  %795 = vmatprep.subr.bf16.mxu1 (!%p212_p10), %v861_v17  ;;  %v864_v20 = vld [vmem:[%s1184_s3 + $0x18] sm:$0xff] (!%p212_p10)   ;;  %v696_v21 = vld [vmem:[%s1183_s2] ss:$0 sm:$0xff] (!%p212_p10)  ;;  %vm475_vm3 = vcmask (!%p212_p10), 523264   ;;  %s732_s15 = sshll.u32 (!%p212_p10), %s951_s21, 9 }
  0x11   : > { %v293_v4 = vand.u32 (!%p212_p10), %v291_v3, %v267_v0  ;;  %799 = vmatpush3.bf16.msra.mxu1 (!%p212_p10), %v861_v17  ;;  %s1131_s24 = scalar_lea.hbm (!%p212_p10), %s1186_s5, %s732_s15  ;;  %s962_s27 = smov (!%p212_p10), [#allocation2]  }
  0x12   : > { %796 = vmatprep.subr.bf16.mxu1 (!%p212_p10), %v862_v18  ;;  %s885_s29 = sshll.u32 (!%p212_p10), %s962_s27, 4  ;;  %s886_s29 = int_to_ptr.vmem [resolvable:$false] %s885_s29 }
  0x13   : > { %769 = vmatprep.subr.bf16.mxu0 (!%p212_p10), %v293_v4  ;;  %s887_s7 = scalar_lea.vmem (!%p212_p10), %s886_s29, 1024 }
  0x14   : > { %770 = vmatpush3.bf16.msra.mxu0 (!%p212_p10), %v293_v4 }
  0x15   : > { %779 = vmatprep.subr.bf16.mxu0 (!%p212_p10), %v861_v17  ;;  %800 = vmatpush3.bf16.msra.mxu1 (!%p212_p10), %v862_v18 }
  0x16   : > { %s245_s9 = scalar_select %p244_p11, %s951_s21, 1  ;;  %797 = vmatprep.subr.bf16.mxu1 %v863_v19 }
  0x18   : > { %s723_s10 = sshll.u32 %s245_s9, 6  ;;  %s240_s9 = sand.u32 1, %s943_s19  }
  0x19   : > { %s251_s13 = scalar_lea.vmem %s1181_s0, %s723_s10  ;;  %801 = vmatpush3.bf16.msra.mxu1 %v863_v19  ;;  %s693_s12 = sshll.u32 %s240_s9, 5 }
  0x1a   : > { %v255_v5 = vld [vmem:[%s251_s13] sm:$0xff]  ;;  %v256_v6 = vld [vmem:[%s251_s13 + $0x8] sm:$0xff]  ;;  %v257_v7 = vld [vmem:[%s251_s13 + $0x10] sm:$0xff]  ;;  %798 = vmatprep.subr.bf16.mxu1 %v864_v20  ;;  %s1135_s25 = scalar_lea.sflag [#allocation3], %s240_s9 }
  0x1b   : > { %v263_v8 = vpack.c.bf16 %v256_v6, %v255_v5  ;;  %v258_v9 = vld [vmem:[%s251_s13 + $0x18] sm:$0xff]  ;;  %v259_v10 = vld [vmem:[%s251_s13 + $0x20] sm:$0xff]  ;;  %v260_v11 = vld [vmem:[%s251_s13 + $0x28] sm:$0xff] }
  0x1c   : > { %v264_v12 = vpack.c.bf16 %v258_v9, %v257_v7  ;;  %v265_v13 = vpack.c.bf16 %v260_v11, %v259_v10  ;;  %v261_v14 = vld [vmem:[%s251_s13 + $0x30] sm:$0xff]  ;;  %v262_v15 = vld [vmem:[%s251_s13 + $0x38] sm:$0xff]  ;;  %s242_s13 = scalar_lea.vmem [#allocation2], %s693_s12 }
  0x1d   : > { %771 = vmatprep.mubr.msk.bf16.mxu0 %vm275_vm2, %v263_v8  ;;  %v266_v16 = vpack.c.bf16 %v262_v15, %v261_v14  ;;  %802 = vmatpush3.bf16.msra.mxu1 %v864_v20  ;;  %s609_s14 = sshll.u32 %s242_s13, 4  ;;  %s1126_s14 = int_to_ptr.vmem [resolvable:$true] %s609_s14 }
  0x1e   : > { %772 = vmatmul.mubr.msk.bf16.vlgmr.msra.gmra.mrb[0].mxu0 %vm275_vm2, %v264_v12  ;;  %s881_s21 = scalar_lea.vmem %s1126_s14, 512  ;;  %p888_p1 = scmp.lt.s32.totalorder %s1126_s14, %s886_s29 }
  0x1f   : > { %775 = vmatprep.mubr.msk.bf16.mxu0 %vm275_vm2, %v265_v13  ;;  %780 = vmatpush3.bf16.msra.mxu0 %v861_v17  ;;  %p882_p12 = scmp.ne.s32.totalorder %s1126_s14, %s881_s21  ;;  %p889_p2 = scmp.lt.s32.totalorder %s887_s7, %s881_s21 }
  0x20   : > { %781 = vmatprep.subr.bf16.mxu0 %v862_v18 }
  0x21   : > { %p883_p13 = pnand %p882_p12, %p1035_p4  ;;  %p890_p3 = por %p889_p2, %p888_p1 }
  0x23   : > { %782 = vmatpush3.bf16.msra.mxu0 %v862_v18  ;;  %p884_p0 = pneg %p883_p13 }
  0x24   : > { %783 = vmatprep.subr.bf16.mxu0 %v863_v19 }
  0x25   : > { %p891_p5 = pnand %p890_p3, %p884_p0 }
  0x26   : > { %776 = vmatmul.mubr.msk.bf16.gmra.mrb[4].mxu0 %vm275_vm2, %v266_v16 }
  0x27   : > { %784 = vmatpush3.bf16.msra.mxu0 %v863_v19 }
  0x28   : > { %785 = vmatprep.subr.bf16.mxu0 %v864_v20 }
  0x2b   : > { %786 = vmatpush3.bf16.msra.mxu0 %v864_v20 }
  0xf1   : > { %v773_v22 = vpop.f32.mrb[0].mxu0 }
  0xf2   : > { %v1073_v23 = vadd.f32 %v773_v22, %v696_v21  ;;  %v329_v24 = vpop.f32.mrb[1].mxu0 }
  0xf3   : > { %v1075_v25 = vadd.f32 %v696_v21, %v329_v24  ;;  %v774_v26 = vpop.f32.mrb[2].mxu0 }
  0xf4   : > { %v370_v27 = vmul.f32 0.044715, %v1073_v23  ;;  %v1078_v28 = vadd.f32 %v774_v26, %v696_v21  ;;  %v332_v29 = vpop.f32.mrb[3].mxu0  ;;  %v362_v20 = vmul.f32 0.5, %v1073_v23 }
  0xf5   : > { %v368_v30 = vmul.f32 0.044715, %v1075_v25  ;;  %v1081_v31 = vadd.f32 %v696_v21, %v332_v29  ;;  %v360_v24 = vmul.f32 0.5, %v1075_v25 }
  0xf6   : > { %v378_v32 = vmul.f32 %v370_v27, %v1073_v23  ;;  %v371_v33 = vmul.f32 0.044715, %v1078_v28 }
  0xf7   : > { %v376_v34 = vmul.f32 %v368_v30, %v1075_v25  ;;  %v369_v35 = vmul.f32 0.044715, %v1081_v31  ;;  %v361_v26 = vmul.f32 0.5, %v1081_v31 }
  0xf8   : > { %v386_v36 = vmul.f32 %v378_v32, %v1073_v23  ;;  %v379_v37 = vmul.f32 %v371_v33, %v1078_v28 }
  0xf9   : > { %v384_v38 = vmul.f32 %v376_v34, %v1075_v25  ;;  %v377_v39 = vmul.f32 %v369_v35, %v1081_v31  ;;  %v777_v40 = vpop.f32.mrb[4].mxu0 }
  0xfa   : > { %v394_v41 = vadd.f32 %v386_v36, %v1073_v23  ;;  %v387_v42 = vmul.f32 %v379_v37, %v1078_v28  ;;  %v1093_v43 = vadd.f32 %v777_v40, %v696_v21  ;;  %v345_v44 = vpop.f32.mrb[5].mxu0 }
  0xfb   : > { %v392_v45 = vadd.f32 %v384_v38, %v1075_v25  ;;  %v385_v46 = vmul.f32 %v377_v39, %v1081_v31  ;;  %v1097_v47 = vadd.f32 %v696_v21, %v345_v44  ;;  %v778_v48 = vpop.f32.mrb[6].mxu0 }
  0xfc   : > { %v402_v49 = vmul.f32 0.7978846, %v394_v41  ;;  %v395_v50 = vadd.f32 %v387_v42, %v1078_v28  ;;  %v374_v51 = vmul.f32 0.044715, %v1093_v43  ;;  %v357_v52 = vadd.f32 %v778_v48, %v696_v21  ;;  %v348_v53 = vpop.f32.mrb[7].mxu0 }
  0xfd   : > { %v400_v54 = vmul.f32 0.7978846, %v392_v45  ;;  %v393_v55 = vadd.f32 %v385_v46, %v1081_v31  ;;  %v372_v56 = vmul.f32 0.044715, %v1097_v47  ;;  %v349_v57 = vadd.f32 %v696_v21, %v348_v53 }
  0xfe   : > { %865 = vtanh.f32 %v402_v49  ;;  %v403_v58 = vmul.f32 0.7978846, %v395_v50  ;;  %v382_v59 = vmul.f32 %v374_v51, %v1093_v43  ;;  %v375_v60 = vmul.f32 0.044715, %v357_v52 }
  0xff   : > { %867 = vtanh.f32 %v400_v54  ;;  %v401_v61 = vmul.f32 0.7978846, %v393_v55  ;;  %v380_v62 = vmul.f32 %v372_v56, %v1097_v47  ;;  %v373_v63 = vmul.f32 0.044715, %v349_v57 }
 0x100   : > { %869 = vtanh.f32 %v403_v58  ;;  %v390_v0 = vmul.f32 %v382_v59, %v1093_v43  ;;  %v383_v1 = vmul.f32 %v375_v60, %v357_v52  ;;  %v363_v21 = vmul.f32 0.5, %v1078_v28 }
 0x101   : > { %871 = vtanh.f32 %v401_v61  ;;  %v381_v2 = vmul.f32 %v373_v63, %v349_v57  ;;  %v388_v3 = vmul.f32 %v380_v62, %v1097_v47  ;;  %v366_v25 = vmul.f32 0.5, %v1093_v43 }
 0x102   : > { %v398_v4 = vadd.f32 %v390_v0, %v1093_v43  ;;  %v391_v5 = vmul.f32 %v383_v1, %v357_v52  ;;  %v367_v31 = vmul.f32 0.5, %v357_v52  ;;  %v364_v41 = vmul.f32 0.5, %v1097_v47  ;;  %v701_v43 = vld [vmem:[%s1185_s4] ss:$0 sm:$0xff] }
 0x103   : > { %v389_v6 = vmul.f32 %v381_v2, %v349_v57  ;;  %v396_v7 = vadd.f32 %v388_v3, %v1097_v47  ;;  %v365_v42 = vmul.f32 0.5, %v349_v57 }
 0x104   : > { %v406_v8 = vmul.f32 0.7978846, %v398_v4  ;;  %v399_v9 = vadd.f32 %v391_v5, %v357_v52 }
 0x105   : > { %v397_v10 = vadd.f32 %v389_v6, %v349_v57  ;;  %v404_v11 = vmul.f32 0.7978846, %v396_v7 }
 0x106   : > { %873 = vtanh.f32 %v406_v8  ;;  %v407_v12 = vmul.f32 0.7978846, %v399_v9 }
 0x107   : > { %v405_v13 = vmul.f32 0.7978846, %v397_v10  ;;  %875 = vtanh.f32 %v404_v11 }
 0x108   : > { %v866_v14 = vpop.eup %865  ;;  %877 = vtanh.f32 %v407_v12 }
 0x109   : > { %v868_v15 = vpop.eup %867  ;;  %v418_v16 = vadd.f32 1.0, %v866_v14  ;;  %879 = vtanh.f32 %v405_v13 }
 0x10a   : > { %v870_v17 = vpop.eup %869  ;;  %v416_v18 = vadd.f32 1.0, %v868_v15 }
 0x10b   : > { %v872_v19 = vpop.eup %871  ;;  %v419_v22 = vadd.f32 1.0, %v870_v17  ;;  %v426_v29 = vmul.f32 %v418_v16, %v362_v20 }
 0x10c   : > { %v417_v27 = vadd.f32 1.0, %v872_v19  ;;  %v424_v32 = vmul.f32 %v416_v18, %v360_v24 }
 0x10d   : > { %v427_v30 = vmul.f32 %v419_v22, %v363_v21 }
 0x10e   : > { %v425_v33 = vmul.f32 %v417_v27, %v361_v26 }
 0x10f   : > { %v433_v34 = vpack.c.bf16 %v427_v30, %v426_v29 }
 0x110   : > { %v874_v35 = vpop.eup %873  ;;  %v432_v36 = vpack.c.bf16 %v425_v33, %v424_v32 }
 0x111   : > { %v876_v37 = vpop.eup %875  ;;  %v422_v38 = vadd.f32 1.0, %v874_v35 }
 0x112   : > { %v878_v39 = vpop.eup %877  ;;  %787 = vmatprep.mubr.msk.bf16.mxu0 %vm475_vm3, %v432_v36  ;;  %v420_v23 = vadd.f32 1.0, %v876_v37 }
 0x113   : > { %v880_v28 = vpop.eup %879  ;;  %788 = vmatmul.mubr.msk.bf16.vlgmr.msra.gmra.mrb[8].mxu0 %vm475_vm3, %v433_v34  ;;  %v423_v40 = vadd.f32 1.0, %v878_v39  ;;  %v430_v45 = vmul.f32 %v422_v38, %v366_v25 }
 0x114   : > { %v421_v44 = vadd.f32 1.0, %v880_v28  ;;  %v428_v48 = vmul.f32 %v420_v23, %v364_v41 }
 0x115   : > { %v431_v46 = vmul.f32 %v423_v40, %v367_v31 }
 0x116   : > { %v429_v49 = vmul.f32 %v421_v44, %v365_v42 }
 0x117   : > { %v435_v50 = vpack.c.bf16 %v431_v46, %v430_v45 }
 0x118   : > { %v434_v51 = vpack.c.bf16 %v429_v49, %v428_v48 }
 0x11a   : > { %791 = vmatprep.mubr.msk.bf16.mxu1 %vm475_vm3, %v434_v51 }
 0x11b   : > { %792 = vmatmul.mubr.msk.bf16.vlgmr.msra.gmra.mrb[0].mxu1 %vm475_vm3, %v435_v50 }
 0x1e6   : > { %v789_v53 = vpop.f32.mrb[8].mxu0 }
 0x1e7   : > { %v522_v52 = vpop.f32.mrb[9].mxu0  ;;  %v531_v54 = vadd.f32 %v789_v53, %v701_v43 }
 0x1e8   : > { %v790_v47 = vpop.f32.mrb[10].mxu0  ;;  %v523_v57 = vadd.f32 %v701_v43, %v522_v52 }
 0x1e9   : > { %v534_v55 = vadd.f32 %v790_v47, %v701_v43  ;;  %v525_v56 = vpop.f32.mrb[11].mxu0 }
 0x1ea   : > { %v526_v58 = vadd.f32 %v701_v43, %v525_v56 }
 0x1eb   : > { %v741_v59 = vpack.c.bf16 %v534_v55, %v531_v54 }
 0x1ec   : > { %v736_v60 = vpack.c.bf16 %v526_v58, %v523_v57 }
 0x1ed   : > { %753 = vst [vmem:[%s242_s13 + $0x8] sm:$0xff] %v741_v59  }
 0x1ee   : > { %737 = vst [vmem:[%s242_s13] sm:$0xff] %v736_v60   ;;  %v793_v61 = vpop.f32.mrb[0].mxu1 }
 0x1ef   : > { %v538_v62 = vpop.f32.mrb[1].mxu1  ;;  %v547_v0 = vadd.f32 %v793_v61, %v701_v43 }
 0x1f0   : > { %v794_v63 = vpop.f32.mrb[2].mxu1  ;;  %v539_v3 = vadd.f32 %v701_v43, %v538_v62 }
 0x1f1   : > { %v550_v1 = vadd.f32 %v794_v63, %v701_v43  ;;  %v541_v2 = vpop.f32.mrb[3].mxu1 }
 0x1f2   : > { %v542_v4 = vadd.f32 %v701_v43, %v541_v2 }
 0x1f3   : > { %v751_v5 = vpack.c.bf16 %v550_v1, %v547_v0 }
 0x1f4   : > { %v746_v6 = vpack.c.bf16 %v542_v4, %v539_v3 }
 0x1f5   : > { %755 = vst [vmem:[%s242_s13 + $0x18] sm:$0xff] %v751_v5  }
 0x1f6   : > { %754 = vst [vmem:[%s242_s13 + $0x10] sm:$0xff] %v746_v6  }
 0x1f7   : > { %894 = shalt.err (!%p891_p5)
}
 0x1f8   : > { %s895_s8 = scalar_lea.hbm %s1131_s24, 512  ;;  %s899_s11 = scalar_lea.hbm %s1186_s5, 1024 }
 0x1f9   : > { %p896_p6 = scmp.ne.s32.totalorder %s1131_s24, %s895_s8  ;;  %p900_p10 = scmp.lt.u32.totalorder %s1131_s24, %s1186_s5 }
 0x1fa   : > { %p901_p11 = scmp.lt.u32.totalorder %s899_s11, %s895_s8  ;;  %p903_p13 = scmp.lt.u32.totalorder %s895_s8, %s1131_s24 }
 0x1fb   : > { %p897_p7 = pnand %p896_p6, %p1035_p4 }
 0x1fc   : > { %p902_p12 = por %p901_p11, %p900_p10 }
 0x1fd   : > { %p898_p9 = pneg %p897_p7 }
 0x1fe   : > { %p904_p0 = por %p903_p13, %p902_p12 }
 0x200   : > { %p905_p1 = pnand %p904_p0, %p898_p9 }
 0x202   : > { %908 = shalt.err (!%p905_p1)
}
 0x203   : > { %s963_s15 = smov 64   ;;  %s964_s16 = smov 4  }
 0x204   : > { %803 = dma.vmem_to_hbm [thread:$0]  (%p1035_p4), %s1126_s14, 512, %s1131_s24, %s1135_s25, %s963_s15, %s963_s15, %s964_s16  }
 0x205 PF: > { %p809_p2 = scmp.ge.s32.totalorder %s959_s23, 2  ;;  %s624_s17 = sand.u32 1, %s939_s18  }
 0x206   : > { %s625_s21 = scalar_lea.sflag [#allocation3], %s624_s17 }
 0x207   : > { %p806_p3 = pnand %p809_p2, %p1042_p8 }
 0x209   : > { %934 = dma.done.wait (!%p806_p3), %s625_s21, 512  }
 0x20a   : > { %936 = vsyncadd (!%p806_p3), %s625_s21, 4294966784  ;;  %s18_s23 = sadd.s32 1, %s959_s23   ;;  %s1189_s18 = smov %s943_s19 }
 0x20b   : > { %p15_p5 = scmp.ge.s32.totalorder %s18_s23, 4   ;;  %s1190_s19 = smov %s947_s20 }
 0x20c   : > { %s1191_s20 = smov %s1048_s6  ;;  %s1192_s21 = smov %s955_s22 }
 0x20d   : > { %s1193_s22 = smov %s1195_s26  ;;  %17 = sbr.rel (!%p15_p5) target bundleno = 4 (0x4), region = 75 }
 0x214   :  { %630 = vsyncpa [#allocation3], 1 }
 0x215   :  { %632 = vsyncpa [#allocation3 + $0x1], 1 }

</bundles_post_ra>
